<compile_context>
chip_gen: v7x
topology: tpu7x:2x2x1
jax: 0.10.0
libtpu: 0.0.40
codegen_flags: <defaults>
</compile_context>

<pallas_src>
import functools

import jax
import jax.numpy as jnp
from jax.experimental import pallas as pl
from jax.experimental.pallas import tpu as pltpu


def _rup(x, m):
    return ((x + m - 1) // m) * m


def _tile_candidates(total, target, align):
    """Divisors of `total` that are multiples of `align` and <= target, descending.
    Falls back to [total] (a full-extent block is always legal)."""
    cands = set()
    if total <= target:
        cands.add(total)
    t = (min(target, total) // align) * align
    while t >= align:
        if total % t == 0:
            cands.add(t)
        t -= align
    if not cands:
        cands.add(total)
    return sorted(cands, reverse=True)


def _vmem_capacity_bytes():
    try:
        return int(pltpu.get_tpu_info().vmem_capacity_bytes)
    except Exception:
        return 64 * 1024 * 1024   # conservative (v7x per-core size); safe everywhere


def _est_vmem_bytes(TB, TRD, D, KDseg, K, T, itemsize_w):
    """Rough VMEM footprint of one grid step (double-buffered blocks + scratch)."""
    f = 4  # f32 activations

    def pad2(rows, cols, b):       # 2-D block: (sublane, lane) padding
        return _rup(rows, 8) * _rup(cols, 128) * b

    def pad3(n, rows, cols, b):    # 3-D block: last two dims padded
        return n * _rup(rows, 8) * _rup(cols, 128) * b

    tot = 0
    tot += 2 * pad2(TB, TRD, f)               # runway tile
    tot += 2 * pad2(TRD, KDseg, itemsize_w)   # folded weight tile
    tot += 2 * pad2(TB, D, f)                 # last runway row
    tot += 2 * 2 * pad2(1, D, f)              # mean, 1/std
    tot += 2 * pad2(1, KDseg, f)              # folded bias
    tot += 2 * pad3(TB, T, K, f)              # bases (resident across RD steps)
    tot += 2 * pad3(TB, T, D, f)              # output block
    tot += pad2(TB, KDseg, f)                 # f32 accumulator scratch
    return tot


# ----------------------------------------------------------------------------
# Fused kernel: (folded) Linear over RD tiles + x0 + basis mix
# ----------------------------------------------------------------------------
def _tbfm_fused_kernel(D, Dseg, K, T, TT,
                       runway_ref, last_ref, mean_ref, inv_std_ref,
                       wp_ref, bp_ref, bases_ref, out_ref, acc_ref):
    j = pl.program_id(1)

    @pl.when(j == 0)
    def _init():
        # Accumulator starts at the folded bias (k-major, segment stride Dseg).
        acc_ref[...] = jnp.broadcast_to(bp_ref[...].astype(jnp.float32),
                                        acc_ref.shape)

    # Partial Linear for this RD tile: (TB, TRD) @ (TRD, K*Dseg), f32 accumulate.
    a = runway_ref[...]
    w = wp_ref[...]
    if a.dtype != w.dtype:          # optional bf16-weight path (static decision)
        a = a.astype(w.dtype)
    acc_ref[...] += jnp.dot(a, w, preferred_element_type=jnp.float32)

    @pl.when(j == pl.num_programs(1) - 1)
    def _finalize():
        # z-scored last runway timestep (x0): (TB, D).
        x0 = (last_ref[...] - mean_ref[...]) * inv_std_ref[...]
        n_chunks = T // TT
        for c in range(n_chunks):                       # static trip count
            t0 = c * TT
            b_chunk = bases_ref[:, t0:t0 + TT, :]       # (TB, TT, K)
            preds = x0[:, None, :]                      # broadcasts to (TB, TT, D)
            for k in range(K):                          # K is small & static
                bw_k = acc_ref[:, k * Dseg:k * Dseg + D]            # (TB, D)
                preds = preds + b_chunk[:, :, k:k + 1] * bw_k[:, None, :]
            out_ref[:, t0:t0 + TT, :] = preds


# ----------------------------------------------------------------------------
# One-time parameter "compilation" (mirrors TBFMCompiled.__init__)
# ----------------------------------------------------------------------------
def fold_tbfm_params(mean, std, weight, bias, runway_len,
                     weight_dtype=jnp.float32):
    """Fold the z-score into the Linear and re-lay its outputs k-major.

    Returns (wp, bp, mean2, inv_std2):
      wp:  (R*D, K*Dseg) folded weight, ready for `runway_flat @ wp`
      bp:  (1, K*Dseg)   folded bias
      mean2, inv_std2: (1, D) for the x0 z-score
    """
    D = mean.shape[0]
    DK, RD = weight.shape
    assert RD == runway_len * D
    K = DK // D

    # 128-aligned per-basis segment stride when the inflation is <= 1.5x
    # (typical real in_dim); otherwise keep dense segments.
    if D % 128 == 0:
        Dseg = D
    else:
        Dp = _rup(D, 128)
        Dseg = Dp if 2 * Dp <= 3 * D else D

    inv_std = 1.0 / std
    inv_std_flat = jnp.tile(inv_std, runway_len)          # (RD,)
    mean_flat = jnp.tile(mean, runway_len)                # (RD,)
    w_scaled = weight * inv_std_flat[None, :]             # (DK, RD)
    b_fold = bias - w_scaled @ mean_flat                  # (DK,)

    # (d, k)-major rows -> k-major segments of stride Dseg; weight transposed to
    # (RD, K*Dseg) so the kernel does a plain `A @ W` on the MXU.
    w_kd = w_scaled.reshape(D, K, RD)                     # [d, k, rd]
    b_kd = b_fold.reshape(D, K)                           # [d, k]
    if Dseg > D:
        w_kd = jnp.pad(w_kd, ((0, Dseg - D), (0, 0), (0, 0)))
        b_kd = jnp.pad(b_kd, ((0, Dseg - D), (0, 0)))
    wp = w_kd.transpose(2, 1, 0).reshape(RD, K * Dseg).astype(weight_dtype)
    bp = b_kd.T.reshape(1, K * Dseg).astype(jnp.float32)
    return wp, bp, mean.reshape(1, D), inv_std.reshape(1, D)


# ----------------------------------------------------------------------------
# Forward wrapper
# ----------------------------------------------------------------------------
def tbfm_compiled_forward(runway, bases, wp, bp, mean2, inv_std2):
    """
    Args:
      runway: (B, R, D) f32
      bases:  (B, T, K) f32   (compiled bases for the stim descriptor)
      wp, bp, mean2, inv_std2: outputs of fold_tbfm_params
    Returns:
      preds: (B, T, D) f32
    """
    B, R, D = runway.shape
    _, T, K = bases.shape
    RD, KDseg = wp.shape
    assert RD == R * D and KDseg % K == 0
    Dseg = KDseg // K
    assert Dseg >= D

    runway_flat = runway.reshape(B, RD)     # row-major view, free
    last_row = runway[:, -1, :]             # (B, D) -> x0 input

    # ---- per-generation VMEM budget -----------------------------------------
    cap = _vmem_capacity_bytes()
    vmem_limit = cap * 3 // 4               # 96 MiB on 128-MiB parts, 48 MiB on v7x
    budget = vmem_limit - (2 << 20)         # slack for compiler-internal scratch

    itemsize_w = jnp.dtype(wp.dtype).itemsize
    est = functools.partial(_est_vmem_bytes, D=D, KDseg=KDseg, K=K, T=T,
                            itemsize_w=itemsize_w)

    # ---- tile selection ------------------------------------------------------
    tb_cands = _tile_candidates(B, 256, 8)          # batch tile target 256
    trd_cands = _tile_candidates(RD, RD, 128)       # reduction tile (full first)

    TB = TRD = None
    # 1) Weight-resident config (TRD = RD): weight DMA'd once per call; take the
    #    largest batch tile that fits.
    for tb in tb_cands:
        if est(tb, RD) <= budget:
            TB, TRD = tb, RD
            break
    # 2) Otherwise stream the weight over RD tiles: maximize TB first (MXU row
    #    fill / reuse per streamed weight byte), then the largest fitting TRD.
    if TB is None:
        for tb in tb_cands:
            for trd in trd_cands:
                if trd != RD and est(tb, trd) <= budget:
                    TB, TRD = tb, trd
                    break
            if TB is not None:
                break
    if TB is None:                           # nothing fits: best-effort smallest tiles
        TB, TRD = tb_cands[-1], trd_cands[-1]

    # Keep >= 2 batch tiles when possible so the "parallel" axis can split across
    # v7x's two TensorCores (cheap on single-core chips: weight stays resident).
    if B // TB == 1 and B >= 16 and (B // 2) % 8 == 0:
        TB = B // 2

    nb, nrd = B // TB, RD // TRD
    TT = _tile_candidates(T, 256, 8)[0]      # epilogue T-chunk (divides T)

    kernel = functools.partial(_tbfm_fused_kernel, D, Dseg, K, T, TT)
    return pl.pallas_call(
        kernel,
        out_shape=jax.ShapeDtypeStruct((B, T, D), jnp.float32),
        grid=(nb, nrd),
        in_specs=[
            pl.BlockSpec((TB, TRD), lambda i, j: (i, j)),       # runway_flat
            pl.BlockSpec((TB, D), lambda i, j: (i, 0)),         # last runway row
            pl.BlockSpec((1, D), lambda i, j: (0, 0)),          # mean
            pl.BlockSpec((1, D), lambda i, j: (0, 0)),          # 1/std
            pl.BlockSpec((TRD, KDseg), lambda i, j: (j, 0)),    # folded weight
            pl.BlockSpec((1, KDseg), lambda i, j: (0, 0)),      # folded bias
            pl.BlockSpec((TB, T, K), lambda i, j: (i, 0, 0)),   # bases (resident over RD)
        ],
        out_specs=pl.BlockSpec((TB, T, D), lambda i, j: (i, 0, 0)),
        scratch_shapes=[pltpu.VMEM((TB, KDseg), jnp.float32)],
        compiler_params=pltpu.CompilerParams(
            dimension_semantics=("parallel", "arbitrary"),
            vmem_limit_bytes=int(vmem_limit),
        ),
    )(runway_flat, last_row, mean2, inv_std2, wp, bp, bases)


# ----------------------------------------------------------------------------
# Pure-JAX reference (mirrors the PyTorch forward exactly, unfolded params)
# ----------------------------------------------------------------------------
def reference_forward(runway, mean, std, weight, bias, bases):
    B, R, D = runway.shape
    z = (runway - mean) / std
    x0 = z[:, -1:, :]
    flat = z.reshape(B, R * D)
    bw = (flat @ weight.T + bias).reshape(B, D, -1)
    preds = jnp.einsum('bdk,btk->btd', bw, bases)
    return preds + x0


if __name__ == "__main__":
    B, R, D, K, T = 2, 8, 4, 8, 16   # batch, runway_len, in_dim, num_bases, trial_len

    key = jax.random.PRNGKey(0)
    k0, k1, k2, k3, k4, k5 = jax.random.split(key, 6)
    runway = jax.random.normal(k0, (B, R, D), jnp.float32)
    mean = 0.1 * jax.random.normal(k1, (D,), jnp.float32)
    std = 0.5 + jax.random.uniform(k2, (D,), jnp.float32)            # strictly positive
    weight = 0.1 * jax.random.normal(k3, (D * K, R * D), jnp.float32)
    bias = 0.1 * jax.random.normal(k4, (D * K,), jnp.float32)
    bases = jax.random.normal(k5, (B, T, K), jnp.float32)

    # "Compile" the TBFM once (parameter folding), then run the fused forward.
    wp, bp, mean2, inv_std2 = fold_tbfm_params(mean, std, weight, bias, R)
    fwd = jax.jit(tbfm_compiled_forward)
    out = jax.block_until_ready(fwd(runway, bases, wp, bp, mean2, inv_std2))

    ref = reference_forward(runway, mean, std, weight, bias, bases)
    assert out.shape == (B, T, D)
    assert jnp.allclose(out, ref, rtol=1e-4, atol=1e-4), "Pallas output mismatch"

    print("KERNEL_OK")
</pallas_src>

<mosaic_0001>
module attributes {stable_mosaic.version = 11 : i64} {
  func.func @_tbfm_fused_kernel(%arg0: i32, %arg1: i32, %arg2: memref<2x32xf32, #tpu.memory_space<vmem>>, %arg3: memref<2x4xf32, #tpu.memory_space<vmem>>, %arg4: memref<1x4xf32, #tpu.memory_space<vmem>>, %arg5: memref<1x4xf32, #tpu.memory_space<vmem>>, %arg6: memref<32x32xf32, #tpu.memory_space<vmem>>, %arg7: memref<1x32xf32, #tpu.memory_space<vmem>>, %arg8: memref<2x16x8xf32, #tpu.memory_space<vmem>>, %arg9: memref<2x16x4xf32, #tpu.memory_space<vmem>>, %arg10: memref<2x32xf32, #tpu.memory_space<vmem>>) attributes {dimension_semantics = [#tpu.dimension_semantics<parallel>, #tpu.dimension_semantics<arbitrary>], iteration_bounds = array<i64: 1, 1>, scalar_prefetch = 0 : i64, scratch_operands = 1 : i64, tpu.core_type = #tpu.core_type<tc>, window_params = [{transform_indices = @transform_0, window_bounds = array<i64: 2, 32>}, {transform_indices = @transform_1, window_bounds = array<i64: 2, 4>}, {pipeline_mode = #tpu.pipeline_mode<synchronous>, transform_indices = @transform_2, window_bounds = array<i64: 1, 4>}, {pipeline_mode = #tpu.pipeline_mode<synchronous>, transform_indices = @transform_3, window_bounds = array<i64: 1, 4>}, {transform_indices = @transform_4, window_bounds = array<i64: 32, 32>}, {pipeline_mode = #tpu.pipeline_mode<synchronous>, transform_indices = @transform_5, window_bounds = array<i64: 1, 32>}, {transform_indices = @transform_6, window_bounds = array<i64: 2, 16, 8>}, {transform_indices = @transform_7, window_bounds = array<i64: 2, 16, 4>}]} {
    %c0_i32 = arith.constant 0 : i32
    %0 = arith.cmpi eq, %arg1, %c0_i32 : i32
    %1 = arith.extui %0 : i1 to i32
    %c0_i32_0 = arith.constant 0 : i32
    %2 = arith.cmpi ne, %1, %c0_i32_0 : i32
    scf.if %2 {
      %c0_10 = arith.constant 0 : index
      %c0_11 = arith.constant 0 : index
      %12 = vector.load %arg7[%c0_10, %c0_11] : memref<1x32xf32, #tpu.memory_space<vmem>>, vector<1x32xf32>
      %13 = vector.shape_cast %12 : vector<1x32xf32> to vector<1x32xf32>
      %14 = vector.broadcast %13 : vector<1x32xf32> to vector<2x32xf32>
      %c0_12 = arith.constant 0 : index
      %c0_13 = arith.constant 0 : index
      %15 = vector.load %arg10[%c0_12, %c0_13] : memref<2x32xf32, #tpu.memory_space<vmem>>, vector<2x32xf32>
      tpu.vector_store %arg10[%c0_12, %c0_13], %14 {strides = array<i32>} : memref<2x32xf32, #tpu.memory_space<vmem>>, vector<2x32xf32>,
    } else {
    }
    %c0 = arith.constant 0 : index
    %c0_1 = arith.constant 0 : index
    %3 = vector.load %arg2[%c0, %c0_1] : memref<2x32xf32, #tpu.memory_space<vmem>>, vector<2x32xf32>
    %c0_2 = arith.constant 0 : index
    %c0_3 = arith.constant 0 : index
    %4 = vector.load %arg6[%c0_2, %c0_3] : memref<32x32xf32, #tpu.memory_space<vmem>>, vector<32x32xf32>
    %c0_4 = arith.constant 0 : index
    %c0_5 = arith.constant 0 : index
    %5 = vector.load %arg10[%c0_4, %c0_5] : memref<2x32xf32, #tpu.memory_space<vmem>>, vector<2x32xf32>
    %cst = arith.constant dense<0.000000e+00> : vector<2x32xf32>
    %6 = tpu.matmul %3, %4, %cst {dimension_numbers = #tpu.dot_dimension_numbers<[1], [0], [0], [1], [0, 0, 1, 1], [], []>} : vector<2x32xf32>, vector<32x32xf32>, vector<2x32xf32> -> vector<2x32xf32>
    %7 = arith.addf %5, %6 : vector<2x32xf32>
    %c0_6 = arith.constant 0 : index
    %c0_7 = arith.constant 0 : index
    %8 = vector.load %arg10[%c0_6, %c0_7] : memref<2x32xf32, #tpu.memory_space<vmem>>, vector<2x32xf32>
    tpu.vector_store %arg10[%c0_6, %c0_7], %7 {strides = array<i32>} : memref<2x32xf32, #tpu.memory_space<vmem>>, vector<2x32xf32>,
    %c0_i32_8 = arith.constant 0 : i32
    %9 = arith.cmpi eq, %arg1, %c0_i32_8 : i32
    %10 = arith.extui %9 : i1 to i32
    %c0_i32_9 = arith.constant 0 : i32
    %11 = arith.cmpi ne, %10, %c0_i32_9 : i32
    scf.if %11 {
      %c0_10 = arith.constant 0 : index
      %c0_11 = arith.constant 0 : index
      %12 = vector.load %arg3[%c0_10, %c0_11] : memref<2x4xf32, #tpu.memory_space<vmem>>, vector<2x4xf32>
      %c0_12 = arith.constant 0 : index
      %c0_13 = arith.constant 0 : index
      %13 = vector.load %arg4[%c0_12, %c0_13] : memref<1x4xf32, #tpu.memory_space<vmem>>, vector<1x4xf32>
      %14 = vector.broadcast %13 : vector<1x4xf32> to vector<2x4xf32>
      %15 = arith.subf %12, %14 : vector<2x4xf32>
      %c0_14 = arith.constant 0 : index
      %c0_15 = arith.constant 0 : index
      %16 = vector.load %arg5[%c0_14, %c0_15] : memref<1x4xf32, #tpu.memory_space<vmem>>, vector<1x4xf32>
      %17 = vector.broadcast %16 : vector<1x4xf32> to vector<2x4xf32>
      %18 = arith.mulf %15, %17 : vector<2x4xf32>
      %c0_16 = arith.constant 0 : index
      %c0_17 = arith.constant 0 : index
      %c0_18 = arith.constant 0 : index
      %19 = vector.load %arg8[%c0_16, %c0_17, %c0_18] : memref<2x16x8xf32, #tpu.memory_space<vmem>>, vector<2x16x8xf32>
      %20 = vector.shape_cast %18 : vector<2x4xf32> to vector<2x1x4xf32>
      %c0_19 = arith.constant 0 : index
      %c0_20 = arith.constant 0 : index
      %21 = vector.load %arg10[%c0_19, %c0_20] : memref<2x32xf32, #tpu.memory_space<vmem>>, vector<2x4xf32>
      %22 = vector.extract_strided_slice %19 {offsets = [0, 0, 0], sizes = [2, 16, 1], strides = [1, 1, 1]} : vector<2x16x8xf32> to vector<2x16x1xf32>
      %23 = vector.shape_cast %21 : vector<2x4xf32> to vector<2x1x4xf32>
      %24 = vector.broadcast %22 : vector<2x16x1xf32> to vector<2x16x4xf32>
      %25 = vector.broadcast %23 : vector<2x1x4xf32> to vector<2x16x4xf32>
      %26 = arith.mulf %24, %25 : vector<2x16x4xf32>
      %27 = vector.broadcast %20 : vector<2x1x4xf32> to vector<2x16x4xf32>
      %28 = arith.addf %27, %26 : vector<2x16x4xf32>
      %c0_21 = arith.constant 0 : index
      %c4 = arith.constant 4 : index
      %29 = vector.load %arg10[%c0_21, %c4] : memref<2x32xf32, #tpu.memory_space<vmem>>, vector<2x4xf32>
      %30 = vector.extract_strided_slice %19 {offsets = [0, 0, 1], sizes = [2, 16, 1], strides = [1, 1, 1]} : vector<2x16x8xf32> to vector<2x16x1xf32>
      %31 = vector.shape_cast %29 : vector<2x4xf32> to vector<2x1x4xf32>
      %32 = vector.broadcast %30 : vector<2x16x1xf32> to vector<2x16x4xf32>
      %33 = vector.broadcast %31 : vector<2x1x4xf32> to vector<2x16x4xf32>
      %34 = arith.mulf %32, %33 : vector<2x16x4xf32>
      %35 = arith.addf %28, %34 : vector<2x16x4xf32>
      %c0_22 = arith.constant 0 : index
      %c8 = arith.constant 8 : index
      %36 = vector.load %arg10[%c0_22, %c8] : memref<2x32xf32, #tpu.memory_space<vmem>>, vector<2x4xf32>
      %37 = vector.extract_strided_slice %19 {offsets = [0, 0, 2], sizes = [2, 16, 1], strides = [1, 1, 1]} : vector<2x16x8xf32> to vector<2x16x1xf32>
      %38 = vector.shape_cast %36 : vector<2x4xf32> to vector<2x1x4xf32>
      %39 = vector.broadcast %37 : vector<2x16x1xf32> to vector<2x16x4xf32>
      %40 = vector.broadcast %38 : vector<2x1x4xf32> to vector<2x16x4xf32>
      %41 = arith.mulf %39, %40 : vector<2x16x4xf32>
      %42 = arith.addf %35, %41 : vector<2x16x4xf32>
      %c0_23 = arith.constant 0 : index
      %c12 = arith.constant 12 : index
      %43 = vector.load %arg10[%c0_23, %c12] : memref<2x32xf32, #tpu.memory_space<vmem>>, vector<2x4xf32>
      %44 = vector.extract_strided_slice %19 {offsets = [0, 0, 3], sizes = [2, 16, 1], strides = [1, 1, 1]} : vector<2x16x8xf32> to vector<2x16x1xf32>
      %45 = vector.shape_cast %43 : vector<2x4xf32> to vector<2x1x4xf32>
      %46 = vector.broadcast %44 : vector<2x16x1xf32> to vector<2x16x4xf32>
      %47 = vector.broadcast %45 : vector<2x1x4xf32> to vector<2x16x4xf32>
      %48 = arith.mulf %46, %47 : vector<2x16x4xf32>
      %49 = arith.addf %42, %48 : vector<2x16x4xf32>
      %c0_24 = arith.constant 0 : index
      %c16 = arith.constant 16 : index
      %50 = vector.load %arg10[%c0_24, %c16] : memref<2x32xf32, #tpu.memory_space<vmem>>, vector<2x4xf32>
      %51 = vector.extract_strided_slice %19 {offsets = [0, 0, 4], sizes = [2, 16, 1], strides = [1, 1, 1]} : vector<2x16x8xf32> to vector<2x16x1xf32>
      %52 = vector.shape_cast %50 : vector<2x4xf32> to vector<2x1x4xf32>
      %53 = vector.broadcast %51 : vector<2x16x1xf32> to vector<2x16x4xf32>
      %54 = vector.broadcast %52 : vector<2x1x4xf32> to vector<2x16x4xf32>
      %55 = arith.mulf %53, %54 : vector<2x16x4xf32>
      %56 = arith.addf %49, %55 : vector<2x16x4xf32>
      %c0_25 = arith.constant 0 : index
      %c20 = arith.constant 20 : index
      %57 = vector.load %arg10[%c0_25, %c20] : memref<2x32xf32, #tpu.memory_space<vmem>>, vector<2x4xf32>
      %58 = vector.extract_strided_slice %19 {offsets = [0, 0, 5], sizes = [2, 16, 1], strides = [1, 1, 1]} : vector<2x16x8xf32> to vector<2x16x1xf32>
      %59 = vector.shape_cast %57 : vector<2x4xf32> to vector<2x1x4xf32>
      %60 = vector.broadcast %58 : vector<2x16x1xf32> to vector<2x16x4xf32>
      %61 = vector.broadcast %59 : vector<2x1x4xf32> to vector<2x16x4xf32>
      %62 = arith.mulf %60, %61 : vector<2x16x4xf32>
      %63 = arith.addf %56, %62 : vector<2x16x4xf32>
      %c0_26 = arith.constant 0 : index
      %c24 = arith.constant 24 : index
      %64 = vector.load %arg10[%c0_26, %c24] : memref<2x32xf32, #tpu.memory_space<vmem>>, vector<2x4xf32>
      %65 = vector.extract_strided_slice %19 {offsets = [0, 0, 6], sizes = [2, 16, 1], strides = [1, 1, 1]} : vector<2x16x8xf32> to vector<2x16x1xf32>
      %66 = vector.shape_cast %64 : vector<2x4xf32> to vector<2x1x4xf32>
      %67 = vector.broadcast %65 : vector<2x16x1xf32> to vector<2x16x4xf32>
      %68 = vector.broadcast %66 : vector<2x1x4xf32> to vector<2x16x4xf32>
      %69 = arith.mulf %67, %68 : vector<2x16x4xf32>
      %70 = arith.addf %63, %69 : vector<2x16x4xf32>
      %c0_27 = arith.constant 0 : index
      %c28 = arith.constant 28 : index
      %71 = vector.load %arg10[%c0_27, %c28] : memref<2x32xf32, #tpu.memory_space<vmem>>, vector<2x4xf32>
      %72 = vector.extract_strided_slice %19 {offsets = [0, 0, 7], sizes = [2, 16, 1], strides = [1, 1, 1]} : vector<2x16x8xf32> to vector<2x16x1xf32>
      %73 = vector.shape_cast %71 : vector<2x4xf32> to vector<2x1x4xf32>
      %74 = vector.broadcast %72 : vector<2x16x1xf32> to vector<2x16x4xf32>
      %75 = vector.broadcast %73 : vector<2x1x4xf32> to vector<2x16x4xf32>
      %76 = arith.mulf %74, %75 : vector<2x16x4xf32>
      %77 = arith.addf %70, %76 : vector<2x16x4xf32>
      %c0_28 = arith.constant 0 : index
      %c0_29 = arith.constant 0 : index
      %c0_30 = arith.constant 0 : index
      %78 = vector.load %arg9[%c0_28, %c0_29, %c0_30] : memref<2x16x4xf32, #tpu.memory_space<vmem>>, vector<2x16x4xf32>
      tpu.vector_store %arg9[%c0_28, %c0_29, %c0_30], %77 {strides = array<i32>} : memref<2x16x4xf32, #tpu.memory_space<vmem>>, vector<2x16x4xf32>,
    } else {
    }
    return
  }
  func.func @transform_0(%arg0: i32, %arg1: i32) -> (i32, i32) {
    %c0_i32 = arith.constant 0 : i32
    return %arg0, %arg1 : i32, i32
  }
  func.func @transform_1(%arg0: i32, %arg1: i32) -> (i32, i32) {
    %c0_i32 = arith.constant 0 : i32
    %c0_i32_0 = arith.constant 0 : i32
    return %arg0, %c0_i32 : i32, i32
  }
  func.func @transform_2(%arg0: i32, %arg1: i32) -> (i32, i32) {
    %c0_i32 = arith.constant 0 : i32
    %c0_i32_0 = arith.constant 0 : i32
    %c0_i32_1 = arith.constant 0 : i32
    return %c0_i32, %c0_i32_0 : i32, i32
  }
  func.func @transform_3(%arg0: i32, %arg1: i32) -> (i32, i32) {
    %c0_i32 = arith.constant 0 : i32
    %c0_i32_0 = arith.constant 0 : i32
    %c0_i32_1 = arith.constant 0 : i32
    return %c0_i32, %c0_i32_0 : i32, i32
  }
  func.func @transform_4(%arg0: i32, %arg1: i32) -> (i32, i32) {
    %c0_i32 = arith.constant 0 : i32
    %c0_i32_0 = arith.constant 0 : i32
    return %arg1, %c0_i32 : i32, i32
  }
  func.func @transform_5(%arg0: i32, %arg1: i32) -> (i32, i32) {
    %c0_i32 = arith.constant 0 : i32
    %c0_i32_0 = arith.constant 0 : i32
    %c0_i32_1 = arith.constant 0 : i32
    return %c0_i32, %c0_i32_0 : i32, i32
  }
  func.func @transform_6(%arg0: i32, %arg1: i32) -> (i32, i32, i32) {
    %c0_i32 = arith.constant 0 : i32
    %c0_i32_0 = arith.constant 0 : i32
    %c0_i32_1 = arith.constant 0 : i32
    return %arg0, %c0_i32, %c0_i32_0 : i32, i32, i32
  }
  func.func @transform_7(%arg0: i32, %arg1: i32) -> (i32, i32, i32) {
    %c0_i32 = arith.constant 0 : i32
    %c0_i32_0 = arith.constant 0 : i32
    %c0_i32_1 = arith.constant 0 : i32
    return %arg0, %c0_i32, %c0_i32_0 : i32, i32, i32
  }
}

</mosaic_0001>

<bundles_post_ra>
// kernel: tbfm_compiled_forward.1
= control target key start
LH: loop header
LB: loop body
LE: loop exit
PB: predicated region body
PF: predicated region fallthrough
CT: control target
= control target key end

     0   :  { %v837_v0 = vmov 0.0|0.0   ;;  %vm838_vm0 = vmmov 0   ;;  %v839_v4 = vmov 0.0   ;;  %v840_v7 = vmov 0   ;;  %s850_s18 = smov 120   ;;  %s851_s19 = smov 116   ;;  %s1076_s4 = inlined_call_operand.vmem [shape: f32[32,32], index: 4, kind: input, shape index: {}]   ;;  %s1077_s6 = inlined_call_operand.vmem [shape: f32[2,16,8], index: 6, kind: input, shape index: {}]   ;;  %s1078_s0 = inlined_call_operand.vmem [shape: f32[2,32], index: 0, kind: input, shape index: {}]   ;;  %s1079_s5 = inlined_call_operand.vmem [shape: f32[1,32], index: 5, kind: input, shape index: {}]   ;;  %s1080_s1 = inlined_call_operand.vmem [shape: f32[2,4], index: 1, kind: input, shape index: {}]   ;;  %s1081_s2 = inlined_call_operand.vmem [shape: f32[1,4], index: 2, kind: input, shape index: {}]   ;;  %s1082_s3 = inlined_call_operand.vmem [shape: f32[1,4], index: 3, kind: input, shape index: {}]   ;;  %s1083_s7 = inlined_call_operand.vmem [shape: f32[2,16,4], index: 7, kind: output, shape index: {}]  }
   0x1   :  { %796 = vmatprep.subr.bf16.mxu0 %v837_v0  ;;  %v40_v1 = vld [vmem:[%s1076_s4] sm:$0xff]  ;;  %v41_v2 = vld [vmem:[%s1076_s4 + $0x8] sm:$0xff]  ;;  %v42_v3 = vld [vmem:[%s1076_s4 + $0x10] sm:$0xff]  ;;  %793 = vmatprep.mubr.msk.f32.mxu0 %vm838_vm0, %v839_v4  ;;  %vm45_vm1 = vcmask 261120   ;;  %v841_v14 = vmov 1   ;;  %v842_v15 = vmov 2   ;;  %v150_v41 = vlaneseq }
   0x2   :  { %v797_v5 = vpack.c.bf16 %v41_v2, %v40_v1  ;;  %v43_v6 = vld [vmem:[%s1076_s4 + $0x18] sm:$0xff]  ;;  %822 = vset.pattern.permute.xlu1 %v840_v7  ;;  %v911_v8 = vld [vmem:[%s1077_s6 + $0x10] sm:$0xff]  ;;  %821 = vset.pattern.permute.xlu0 %v840_v7  ;;  %v142_v9 = vld [vmem:[%s1077_s6] sm:$0xff]  ;;  %v843_v16 = vmov 3   ;;  %v844_v17 = vmov 4   ;;  %v845_v18 = vmov 5  }
   0x3   :  { %205 = vperm.xlu1 %822, %v911_v8   ;;  %v800_v10 = vpack.c.bf16 %v43_v6, %v42_v3  ;;  %v145_v11 = vld [vmem:[%s1077_s6 + $0x18] sm:$0xff]  ;;  %195 = vperm.xlu0 %821, %v142_v9   ;;  %v143_v12 = vld [vmem:[%s1077_s6 + $0x8] sm:$0xff]  ;;  %v39_v13 = vld [vmem:[%s1078_s0] sm:$0x3]  ;;  %v846_v19 = vmov 6   ;;  %v847_v20 = vmov 7  }
   0x4   :  { %798 = vmatpush3.bf16.msra.mxu0 %v797_v5  ;;  %vm37_vm2 = vcmask 254976   ;;  %v768_v21 = vld [vmem:[%s1079_s5] ss:$0 sm:$0xff]  ;;  %v848_v39 = vmov 1966171168   ;;  %v151_v48 = vshrl.u32 %v150_v41, 7 }
   0x5   :  { %799 = vmatprep.subr.bf16.mxu0 %v837_v0  ;;  %38 = vst.msk [vmem:[#allocation2] sm:$0x3] %vm37_vm2, %v768_v21  ;;  %v148_v40 = vunpack.c.l.s4 %v848_v39  ;;  %s849_s5 = smov 124   ;;  %s852_s20 = smov 112   ;;  %v125_v39 = vld [vmem:[%s1080_s1] sm:$0x3] }
   0x6   :  { %v962_v52 = vsub.s32 0, %v151_v48  ;;  %s853_s21 = smov 108   ;;  %s854_s22 = smov 104   ;;  %vm759_vm3 = vcmask 31744  }
   0x7   :  { %210 = vperm.xlu1 %822, %v145_v11   ;;  %200 = vperm.xlu0 %821, %v143_v12   ;;  %v149_v47 = vunpack.c.0.s8 %v148_v40  ;;  %s855_s23 = smov 100   ;;  %v770_v40 = vld [vmem:[%s1081_s2] ss:$0 sm:$0xff] }
   0x8   :  { %801 = vmatpush3.bf16.msra.mxu0 %v800_v10  ;;  %v133_v41 = vsub.f32 %v125_v39, %v770_v40 }
   0x9   :  { %v960_v49 = vsub.s32 %v149_v47, %v151_v48 }
   0xb   :  { %794 = vmatmul.mubr.msk.f32.vlgmr.msra.gmra.mrb[0].mxu0 %vm45_vm1, %v39_v13  ;;  %824 = vset.pattern.permute.xlu1 %v841_v14 }
   0xc   :  { %270 = vperm.xlu1 %824, %v143_v12   ;;  %823 = vset.pattern.permute.xlu0 %v841_v14  ;;  %v44_v38 = vld [vmem:[#allocation2] sm:$0x3] }
   0xd   :  { %266 = vperm.xlu0 %823, %v142_v9  }
  0x10   :  { %274 = vperm.xlu1 %824, %v911_v8  }
  0x11   :  { %278 = vperm.xlu0 %823, %v145_v11  }
  0x14   :  { %825 = vset.pattern.permute.xlu1 %v842_v15 }
  0x15   :  { %340 = vperm.xlu1 %825, %v142_v9   ;;  %826 = vset.pattern.permute.xlu0 %v842_v15 }
  0x16   :  { %344 = vperm.xlu0 %826, %v143_v12  }
  0x19   :  { %348 = vperm.xlu1 %825, %v911_v8  }
  0x1a   :  { %827 = vset.pattern.permute.xlu0 %v843_v16 }
  0x1b   :  { %414 = vperm.xlu0 %827, %v142_v9  }
  0x1d   :  { %352 = vperm.xlu1 %825, %v145_v11  }
  0x1f   :  { %426 = vperm.xlu0 %827, %v145_v11  }
  0x21   :  { %828 = vset.pattern.permute.xlu1 %v843_v16 }
  0x22   :  { %418 = vperm.xlu1 %828, %v143_v12  }
  0x23   :  { %830 = vset.pattern.permute.xlu0 %v844_v17 }
  0x24   :  { %492 = vperm.xlu0 %830, %v143_v12  }
  0x26   :  { %422 = vperm.xlu1 %828, %v911_v8  }
  0x28   :  { %831 = vset.pattern.permute.xlu0 %v845_v18 }
  0x29   :  { %562 = vperm.xlu0 %831, %v142_v9  }
  0x2a   :  { %829 = vset.pattern.permute.xlu1 %v844_v17 }
  0x2b   :  { %488 = vperm.xlu1 %829, %v142_v9  }
  0x2d   :  { %574 = vperm.xlu0 %831, %v145_v11  }
  0x2f   :  { %496 = vperm.xlu1 %829, %v911_v8  }
  0x31   :  { %834 = vset.pattern.permute.xlu0 %v846_v19 }
  0x32   :  { %640 = vperm.xlu0 %834, %v143_v12  }
  0x33   :  { %500 = vperm.xlu1 %829, %v145_v11  }
  0x36   :  { %835 = vset.pattern.permute.xlu0 %v847_v20 }
  0x37   :  { %832 = vset.pattern.permute.xlu1 %v845_v18  ;;  %710 = vperm.xlu0 %835, %v142_v9  }
  0x38   :  { %566 = vperm.xlu1 %832, %v143_v12  }
  0x3b   :  { %722 = vperm.xlu0 %835, %v145_v11  }
  0x3c   :  { %570 = vperm.xlu1 %832, %v911_v8  }
  0x40   :  { %833 = vset.pattern.permute.xlu1 %v846_v19 }
  0x41   :  { %636 = vperm.xlu1 %833, %v142_v9  }
  0x45   :  { %644 = vperm.xlu1 %833, %v911_v8  }
  0x49   :  { %648 = vperm.xlu1 %833, %v145_v11  }
  0x4d   :  { %836 = vset.pattern.permute.xlu1 %v847_v20 }
  0x4e   :  { %714 = vperm.xlu1 %836, %v143_v12  }
  0x52   :  { %718 = vperm.xlu1 %836, %v911_v8  }
  0x82   :  { %v937_v22 = vpop.permute.xlu1 %205  ;;  %v947_v29 = vpop.permute.xlu0 %195 }
  0x86   :  { %v939_v23 = vpop.permute.xlu1 %210  ;;  %v949_v31 = vpop.permute.xlu0 %200 }
  0x8b   :  { %v271_v24 = vpop.permute.xlu1 %270 }
  0x8c   :  { %v267_v33 = vpop.permute.xlu0 %266 }
  0x8f   :  { %v941_v25 = vpop.permute.xlu1 %274 }
  0x90   :  { %v953_v35 = vpop.permute.xlu0 %278 }
  0x94   :  { %v341_v26 = vpop.permute.xlu1 %340 }
  0x95   :  { %v345_v37 = vpop.permute.xlu0 %344 }
  0x98   :  { %v943_v27 = vpop.permute.xlu1 %348 }
  0x9a   :  { %v415_v46 = vpop.permute.xlu0 %414 }
  0x9c   :  { %v945_v28 = vpop.permute.xlu1 %352 }
  0x9e   :  { %v427_v51 = vpop.permute.xlu0 %426 }
  0xa1   :  { %v419_v30 = vpop.permute.xlu1 %418 }
  0xa3   :  { %v493_v57 = vpop.permute.xlu0 %492 }
  0xa5   :  { %v951_v32 = vpop.permute.xlu1 %422 }
  0xa8   :  { %v563_v63 = vpop.permute.xlu0 %562 }
  0xaa   :  { %v489_v34 = vpop.permute.xlu1 %488 }
  0xac   :  { %v575_v3 = vpop.permute.xlu0 %574 }
  0xae   :  { %v955_v36 = vpop.permute.xlu1 %496 }
  0xb1   :  { %v641_v10 = vpop.permute.xlu0 %640 }
  0xb2   :  { %v957_v45 = vpop.permute.xlu1 %500 }
  0xb6   :  { %v711_v15 = vpop.permute.xlu0 %710 }
  0xb7   :  { %v567_v50 = vpop.permute.xlu1 %566 }
  0xbb   :  { %v968_v56 = vpop.permute.xlu1 %570 }
  0xc0   :  { %v637_v62 = vpop.permute.xlu1 %636 }
  0xc4   :  { %v645_v2 = vpop.permute.xlu1 %644 }
  0xc8   :  { %v649_v9 = vpop.permute.xlu1 %648 }
  0xcd   :  { %v715_v14 = vpop.permute.xlu1 %714 }
  0xde   :  { %v115_v42 = vpop.f32.mrb[0].mxu0 }
  0xdf   :  { %v119_v43 = vadd.f32 %v115_v42, %v44_v38  ;;  %v795_v44 = vpop.f32.mrb[1].mxu0  ;;  %v771_v42 = vld [vmem:[%s1082_s3] ss:$0 sm:$0xff] }
  0xe1   :  { %121 = vst.msk [vmem:[#allocation2] sm:$0x3] %vm37_vm2, %v119_v43  ;;  %v141_v43 = vmul.f32 %v771_v42, %v133_v41 }
  0xe3   :  { %v153_v44 = vrot.slane %v141_v43, %v960_v49 }
  0xe5   :  { %v161_v47 = vrot.slane %v153_v44, %v960_v49 }
  0xe8   :  { %v778_v53 = vld.sshfl [vmem:[#allocation2] sm:$0x11 pattern:$0x75316420] }
  0xe9   :  { %v627_v54 = vrot.slane %v778_v53, %v960_v49  ;;  %v620_v6 = vcombine.high %v778_v53, %v778_v53 }
  0xeb   :  { %v966_v55 = vrot.slane %v627_v54, %v962_v52  ;;  %v634_v11 = vrot.slane %v620_v6, %v960_v49 }
  0xed   :  { %v292_v58 = vmul.f32 %v966_v55, %v271_v24  ;;  %v291_v59 = vmul.f32 %v966_v55, %v267_v33  ;;  %v366_v60 = vmul.f32 %v966_v55, %v345_v37  ;;  %v365_v61 = vmul.f32 %v966_v55, %v341_v26  ;;  %v723_v37 = vpop.permute.xlu0 %722 }
  0xee   :  { %v440_v0 = vmul.f32 %v966_v55, %v419_v30  ;;  %v439_v1 = vmul.f32 %v966_v55, %v415_v46  ;;  %v514_v4 = vmul.f32 %v966_v55, %v493_v57  ;;  %v513_v5 = vmul.f32 %v966_v55, %v489_v34 }
  0xef   :  { %301 = vrot.lane.b32.xlu0 %v292_v58, %s849_s5  ;;  %299 = vrot.lane.b32.xlu1 %v291_v59, %s849_s5  ;;  %v588_v7 = vmul.f32 %v966_v55, %v567_v50  ;;  %v587_v8 = vmul.f32 %v966_v55, %v563_v63  ;;  %v662_v12 = vmul.f32 %v966_v55, %v641_v10 }
  0xf0   :  { %v661_v13 = vmul.f32 %v966_v55, %v637_v62  ;;  %v996_v16 = vrot.slane %v634_v11, %v962_v52  ;;  %v736_v17 = vmul.f32 %v715_v14, %v966_v55  ;;  %v735_v18 = vmul.f32 %v711_v15, %v966_v55 }
  0xf1   :  { %v224_v53 = vmul.f32 %v966_v55, %v949_v31  ;;  %v223_v54 = vmul.f32 %v966_v55, %v947_v29  ;;  %v154_v15 = vcombine.high %v153_v44, %v153_v44 }
  0xf2   :  { %v294_v19 = vmul.f32 %v996_v16, %v953_v35  ;;  %v293_v20 = vmul.f32 %v996_v16, %v941_v25  ;;  %v368_v21 = vmul.f32 %v996_v16, %v945_v28  ;;  %v367_v24 = vmul.f32 %v996_v16, %v943_v27  ;;  %v719_v35 = vpop.permute.xlu1 %718 }
  0xf3   :  { %375 = vrot.lane.b32.xlu0 %v366_v60, %s850_s18  ;;  %373 = vrot.lane.b32.xlu1 %v365_v61, %s850_s18  ;;  %v442_v26 = vmul.f32 %v996_v16, %v427_v51  ;;  %v441_v30 = vmul.f32 %v996_v16, %v951_v32  ;;  %v516_v25 = vmul.f32 %v996_v16, %v957_v45 }
  0xf4   :  { %v515_v28 = vmul.f32 %v996_v16, %v955_v36  ;;  %v590_v27 = vmul.f32 %v996_v16, %v575_v3  ;;  %v589_v33 = vmul.f32 %v996_v16, %v968_v56  ;;  %v663_v32 = vmul.f32 %v996_v16, %v645_v2 }
  0xf5   :  { %v664_v34 = vmul.f32 %v996_v16, %v649_v9  ;;  %v737_v36 = vmul.f32 %v719_v35, %v996_v16  ;;  %v738_v38 = vmul.f32 %v723_v37, %v996_v16  ;;  %v230_v51 = vrot.slane %v161_v47, %v962_v52 }
  0xf7   :  { %449 = vrot.lane.b32.xlu0 %v440_v0, %s851_s19  ;;  %447 = vrot.lane.b32.xlu1 %v439_v1, %s851_s19  ;;  %v238_v58 = vadd.f32 %v230_v51, %v224_v53  ;;  %v237_v59 = vadd.f32 %v230_v51, %v223_v54 }
  0xfb   :  { %523 = vrot.lane.b32.xlu0 %v514_v4, %s852_s20  ;;  %521 = vrot.lane.b32.xlu1 %v513_v5, %s852_s20 }
  0xff   :  { %597 = vrot.lane.b32.xlu0 %v588_v7, %s853_s21  ;;  %595 = vrot.lane.b32.xlu1 %v587_v8, %s853_s21 }
 0x103   :  { %671 = vrot.lane.b32.xlu0 %v662_v12, %s854_s22  ;;  %669 = vrot.lane.b32.xlu1 %v661_v13, %s854_s22 }
 0x107   :  { %745 = vrot.lane.b32.xlu0 %v736_v17, %s855_s23  ;;  %743 = vrot.lane.b32.xlu1 %v735_v18, %s855_s23 }
 0x10b   :  { %305 = vrot.lane.b32.xlu0 %v294_v19, %s849_s5  ;;  %303 = vrot.lane.b32.xlu1 %v293_v20, %s849_s5  ;;  %v168_v19 = vrot.slane %v154_v15, %v960_v49 }
 0x10f   :  { %379 = vrot.lane.b32.xlu0 %v368_v21, %s850_s18  ;;  %377 = vrot.lane.b32.xlu1 %v367_v24, %s850_s18  ;;  %v234_v24 = vrot.slane %v168_v19, %v962_v52 }
 0x113   :  { %453 = vrot.lane.b32.xlu0 %v442_v26, %s851_s19  ;;  %451 = vrot.lane.b32.xlu1 %v441_v30, %s851_s19  ;;  %v226_v26 = vmul.f32 %v996_v16, %v939_v23  ;;  %v225_v30 = vmul.f32 %v996_v16, %v937_v22 }
 0x117   :  { %527 = vrot.lane.b32.xlu0 %v516_v25, %s852_s20  ;;  %525 = vrot.lane.b32.xlu1 %v515_v28, %s852_s20 }
 0x11b   :  { %601 = vrot.lane.b32.xlu0 %v590_v27, %s853_s21  ;;  %599 = vrot.lane.b32.xlu1 %v589_v33, %s853_s21  ;;  %v240_v27 = vadd.f32 %v234_v24, %v226_v26  ;;  %v239_v33 = vadd.f32 %v234_v24, %v225_v30 }
 0x11f   :  { %675 = vrot.lane.b32.xlu0 %v664_v34, %s854_s22  ;;  %673 = vrot.lane.b32.xlu1 %v663_v32, %s854_s22 }
 0x123   :  { %749 = vrot.lane.b32.xlu0 %v738_v38, %s855_s23  ;;  %747 = vrot.lane.b32.xlu1 %v737_v36, %s855_s23 }
 0x161   :  { %v302_v45 = vpop.permute.xlu0 %301  ;;  %v300_v46 = vpop.permute.xlu1 %299 }
 0x162   :  { %v312_v62 = vadd.f32 %v302_v45, %v238_v58  ;;  %v311_v63 = vadd.f32 %v300_v46, %v237_v59 }
 0x165   :  { %v376_v48 = vpop.permute.xlu0 %375  ;;  %v374_v50 = vpop.permute.xlu1 %373 }
 0x166   :  { %v386_v0 = vadd.f32 %v376_v48, %v312_v62  ;;  %v385_v1 = vadd.f32 %v374_v50, %v311_v63 }
 0x169   :  { %v450_v56 = vpop.permute.xlu0 %449  ;;  %v448_v57 = vpop.permute.xlu1 %447 }
 0x16a   :  { %v460_v4 = vadd.f32 %v450_v56, %v386_v0  ;;  %v459_v5 = vadd.f32 %v448_v57, %v385_v1 }
 0x16d   :  { %v524_v60 = vpop.permute.xlu0 %523  ;;  %v522_v61 = vpop.permute.xlu1 %521 }
 0x16e   :  { %v534_v6 = vadd.f32 %v524_v60, %v460_v4  ;;  %v533_v7 = vadd.f32 %v522_v61, %v459_v5 }
 0x171   :  { %v598_v2 = vpop.permute.xlu0 %597  ;;  %v596_v3 = vpop.permute.xlu1 %595 }
 0x172   :  { %v608_v9 = vadd.f32 %v598_v2, %v534_v6  ;;  %v607_v29 = vadd.f32 %v596_v3, %v533_v7 }
 0x175   :  { %v672_v31 = vpop.permute.xlu0 %671  ;;  %v670_v8 = vpop.permute.xlu1 %669 }
 0x176   :  { %v682_v55 = vadd.f32 %v672_v31, %v608_v9  ;;  %v681_v10 = vadd.f32 %v670_v8, %v607_v29 }
 0x179   :  { %v746_v11 = vpop.permute.xlu0 %745  ;;  %v744_v12 = vpop.permute.xlu1 %743 }
 0x17a   :  { %v756_v13 = vadd.f32 %v746_v11, %v682_v55  ;;  %v755_v14 = vadd.f32 %v744_v12, %v681_v10 }
 0x17c   :  { %761 = vst.msk [vmem:[%s1083_s7 + $0x8] sm:$0xff] %vm759_vm3, %v756_v13  ;;  %760 = vst.msk [vmem:[%s1083_s7] sm:$0xff] %vm759_vm3, %v755_v14 }
 0x17d   :  { %v306_v17 = vpop.permute.xlu0 %305  ;;  %v304_v18 = vpop.permute.xlu1 %303 }
 0x17e   :  { %v314_v35 = vadd.f32 %v306_v17, %v240_v27  ;;  %v313_v37 = vadd.f32 %v304_v18, %v239_v33 }
 0x181   :  { %v380_v20 = vpop.permute.xlu0 %379  ;;  %v378_v21 = vpop.permute.xlu1 %377 }
 0x182   :  { %v388_v36 = vadd.f32 %v380_v20, %v314_v35  ;;  %v387_v49 = vadd.f32 %v378_v21, %v313_v37 }
 0x185   :  { %v454_v25 = vpop.permute.xlu0 %453  ;;  %v452_v28 = vpop.permute.xlu1 %451 }
 0x186   :  { %v462_v40 = vadd.f32 %v454_v25, %v388_v36  ;;  %v461_v52 = vadd.f32 %v452_v28, %v387_v49 }
 0x189   :  { %v528_v32 = vpop.permute.xlu0 %527  ;;  %v526_v34 = vpop.permute.xlu1 %525 }
 0x18a   :  { %v536_v41 = vadd.f32 %v528_v32, %v462_v40  ;;  %v535_v42 = vadd.f32 %v526_v34, %v461_v52 }
 0x18d   :  { %v602_v38 = vpop.permute.xlu0 %601  ;;  %v600_v39 = vpop.permute.xlu1 %599 }
 0x18e   :  { %v610_v44 = vadd.f32 %v602_v38, %v536_v41  ;;  %v609_v22 = vadd.f32 %v600_v39, %v535_v42 }
 0x191   :  { %v676_v23 = vpop.permute.xlu0 %675  ;;  %v674_v43 = vpop.permute.xlu1 %673 }
 0x192   :  { %v684_v16 = vadd.f32 %v676_v23, %v610_v44  ;;  %v683_v45 = vadd.f32 %v674_v43, %v609_v22 }
 0x195   :  { %v750_v46 = vpop.permute.xlu0 %749  ;;  %v748_v47 = vpop.permute.xlu1 %747 }
 0x196   :  { %v758_v48 = vadd.f32 %v750_v46, %v684_v16  ;;  %v757_v50 = vadd.f32 %v748_v47, %v683_v45 }
 0x198   :  { %763 = vst.msk [vmem:[%s1083_s7 + $0x18] sm:$0xff] %vm759_vm3, %v758_v48  ;;  %762 = vst.msk [vmem:[%s1083_s7 + $0x10] sm:$0xff] %vm759_vm3, %v757_v50 }

</bundles_post_ra>
